<compile_context>
chip_gen: v5e
topology: v5e:2x2
jax: 0.10.0
libtpu: 0.0.40
codegen_flags: <defaults>
</compile_context>

<pallas_src>
import functools

import jax
import jax.numpy as jnp
from jax import lax
from jax.experimental import pallas as pl
from jax.experimental.pallas import tpu as pltpu


def _round_up(x: int, m: int) -> int:
    return (x + m - 1) // m * m


def _cdiv(a: int, b: int) -> int:
    return (a + b - 1) // b


@functools.lru_cache(maxsize=1)
def _vmem_capacity_bytes() -> int:
    """Physical VMEM of the attached chip; conservative fallback (v7x size)."""
    try:
        return int(pltpu.get_tpu_info().vmem_capacity_bytes)
    except Exception:  # non-TPU tracing / API drift — assume the smallest chip
        return 64 << 20


def _pick_tile(dim: int, target: int, align: int, floor: int = None) -> int:
    """Tile for `dim`: full extent if small; else the largest `align`-multiple
    divisor in [floor, target] (no padding); else `target` (caller pads).
    The floor rejects pathologically small divisor tiles — padding a streamed
    operand is far cheaper than the extra HBM re-reads of tiny tiles."""
    if dim <= target:
        return dim  # full-extent block always satisfies the (8,128) rule
    target = (target // align) * align
    if floor is None:
        floor = max(align, target // 2)
    t = target
    while t >= floor:
        if dim % t == 0:
            return t
        t -= align
    return target  # no acceptable divisor: caller pads


def _make_kernel(has_bias: bool, multi_k: bool, acc_in_out: bool,
                 kn_layout: bool):
    """x_ref (tm, tk); w_ref (tn, tk) [PyTorch layout] or (tk, tn) [kn layout];
    optional b_ref (1, tn) per-j block; o_ref (tm, tn);
    acc_ref (tm, tn) f32 scratch only when multi_k and not acc_in_out."""
    contract = ((((1,), (0,)) if kn_layout else ((1,), (1,))), ((), ()))

    def dot(x, w):
        return lax.dot_general(x, w, dimension_numbers=contract,
                               preferred_element_type=jnp.float32)

    def kernel(*refs):
        if has_bias:
            x_ref, w_ref, b_ref, *rest = refs
        else:
            x_ref, w_ref, *rest = refs
            b_ref = None

        if multi_k and acc_in_out:
            # f32 output: accumulate straight into the resident output block.
            (o_ref,) = rest
            k = pl.program_id(2)

            @pl.when(k == 0)
            def _():
                o_ref[...] = jnp.zeros_like(o_ref)

            o_ref[...] += dot(x_ref[...], w_ref[...])

            if has_bias:
                @pl.when(k == pl.num_programs(2) - 1)
                def _():
                    o_ref[...] += b_ref[...].astype(o_ref.dtype)

        elif multi_k:
            o_ref, acc_ref = rest
            k = pl.program_id(2)

            @pl.when(k == 0)
            def _():
                acc_ref[...] = jnp.zeros_like(acc_ref)

            acc_ref[...] += dot(x_ref[...], w_ref[...])

            @pl.when(k == pl.num_programs(2) - 1)
            def _():
                acc = acc_ref[...]
                if has_bias:
                    acc = acc + b_ref[...].astype(jnp.float32)
                o_ref[...] = acc.astype(o_ref.dtype)

        else:
            # Single K step: write straight to the output tile, no scratch.
            (o_ref,) = rest
            acc = dot(x_ref[...], w_ref[...])
            if has_bias:
                acc = acc + b_ref[...].astype(jnp.float32)
            o_ref[...] = acc.astype(o_ref.dtype)

    return kernel


@functools.partial(
    jax.jit,
    static_argnames=("weight_layout", "tm", "tn", "tk", "compute_dtype"))
def linear_pallas(x, weight, bias=None, *, weight_layout="nk",
                  tm=None, tn=None, tk=None, compute_dtype=None):
    """y = x @ W^T + bias.

    weight_layout="nk": weight is PyTorch (out_features, in_features).
    weight_layout="kn": weight is pre-transposed (in_features, out_features)
      (transpose once at parameter-load time; the kernel then does the
      natural [M,K]x[K,N] contraction).
    compute_dtype: e.g. jnp.bfloat16 for f32 inputs — f32 accumulation is
      kept via preferred_element_type; results differ from exact f32.
    """
    orig_shape = x.shape
    K = orig_shape[-1]
    kn_layout = (weight_layout == "kn")
    if kn_layout:
        Kw, N = weight.shape
    else:
        N, Kw = weight.shape
    assert Kw == K, f"weight in_features {Kw} != x last dim {K}"
    out_dtype = x.dtype

    x2d = x.reshape(-1, K)
    M = x2d.shape[0]

    if compute_dtype is not None:
        x2d = x2d.astype(compute_dtype)
        weight = weight.astype(compute_dtype)

    # ---- Generation-aware tile caps & VMEM budget ----
    vmem_cap = _vmem_capacity_bytes()
    big_vmem = vmem_cap >= (96 << 20)          # v5e / v6e (128 MiB)
    tm_cap = 1024 if big_vmem else 512
    tn_cap = 1024 if big_vmem else 512
    tk_cap = 1024
    gemv_like = M <= 256
    if gemv_like:
        # Weight-HBM-bandwidth bound: bigger K block per step (fewer, larger
        # weight DMAs; less per-step overhead).
        tk_cap = 2048

    # Sublane packing of the compute dtype: 8 (f32), 16 (bf16), 32 (int8/fp8).
    cdt = jnp.dtype(compute_dtype) if compute_dtype is not None else jnp.dtype(out_dtype)
    sublane = {4: 8, 2: 16, 1: 32}.get(cdt.itemsize, 8)

    # Lane-dense output: N padded up to a multiple of 128.
    Np0 = _round_up(N, 128)

    tm_auto, tn_auto = tm is None, tn is None
    tm = tm or _pick_tile(M, tm_cap, sublane)
    tn = tn or _pick_tile(Np0, tn_cap, 128)
    tk = tk or _pick_tile(K, tk_cap, 128)

    # Megacore (v7x, 2 TCs): if the parallel grid is a single block, split it
    # so both cores get work.  Only on small-VMEM (v7x-like) chips.
    if (not big_vmem) and tm_auto and tn_auto \
            and _cdiv(M, tm) * _cdiv(Np0, tn) == 1:
        if tn % 256 == 0:
            tn //= 2
        elif tm % (2 * sublane) == 0 and tm >= 2 * sublane:
            tm //= 2

    # ---- Pad to tile multiples (zero rows/cols are benign for the dot). ----
    # TODO(synk): for large layers with non-tile-multiple N/K, pre-pad the
    # weight once at parameter-load time to avoid this per-call HBM pass.
    Mp, Np, Kp = _round_up(M, tm), _round_up(Np0, tn), _round_up(K, tk)
    if (Mp, Kp) != (M, K):
        x2d = jnp.pad(x2d, ((0, Mp - M), (0, Kp - K)))
    if kn_layout:
        if (Kp, Np) != (K, N):
            weight = jnp.pad(weight, ((0, Kp - K), (0, Np - N)))
    else:
        if (Np, Kp) != (N, K):
            weight = jnp.pad(weight, ((0, Np - N), (0, Kp - K)))

    has_bias = bias is not None
    if has_bias:
        b2d = bias if Np == N else jnp.pad(bias, (0, Np - N))
        b2d = b2d.reshape(1, Np)

    m_blocks, n_blocks, k_blocks = Mp // tm, Np // tn, Kp // tk
    multi_k = k_blocks > 1
    acc_in_out = multi_k and jnp.dtype(out_dtype) == jnp.dtype(jnp.float32)

    # Deeper weight-stream buffering for GEMV-like calls (MXU waits on DMA).
    w_kwargs = {}
    if gemv_like and n_blocks * k_blocks >= 3:
        w_kwargs["pipeline_mode"] = pl.Buffered(3)

    if multi_k:
        grid = (m_blocks, n_blocks, k_blocks)
        x_spec = pl.BlockSpec((tm, tk), lambda i, j, k: (i, k))
        if kn_layout:
            w_spec = pl.BlockSpec((tk, tn), lambda i, j, k: (k, j), **w_kwargs)
        else:
            w_spec = pl.BlockSpec((tn, tk), lambda i, j, k: (j, k), **w_kwargs)
        b_spec = pl.BlockSpec((1, tn), lambda i, j, k: (0, j))
        o_spec = pl.BlockSpec((tm, tn), lambda i, j, k: (i, j))
        scratch = [] if acc_in_out else [pltpu.VMEM((tm, tn), jnp.float32)]
        semantics = ("parallel", "parallel", "arbitrary")
    else:
        grid = (m_blocks, n_blocks)
        x_spec = pl.BlockSpec((tm, Kp), lambda i, j: (i, 0))
        if kn_layout:
            w_spec = pl.BlockSpec((Kp, tn), lambda i, j: (0, j), **w_kwargs)
        else:
            w_spec = pl.BlockSpec((tn, Kp), lambda i, j: (j, 0), **w_kwargs)
        b_spec = pl.BlockSpec((1, tn), lambda i, j: (0, j))
        o_spec = pl.BlockSpec((tm, tn), lambda i, j: (i, j))
        scratch = []
        semantics = ("parallel", "parallel")

    # ---- VMEM budget (double-buffered streams + accumulator). ----
    itm = x2d.dtype.itemsize
    itw = weight.dtype.itemsize
    ito = jnp.dtype(out_dtype).itemsize
    wbuf = 3 if "pipeline_mode" in w_kwargs else 2
    eff_tk = tk if multi_k else Kp
    need = (2 * tm * eff_tk * itm
            + wbuf * tn * eff_tk * itw
            + 2 * tm * tn * ito
            + (tm * tn * 4 if (multi_k and not acc_in_out) else 0)
            + (2 * tn * 4 if has_bias else 0))
    hard_cap = (100 << 20) if big_vmem else (48 << 20)
    vmem_limit = int(min(max(need * 3 // 2 + (4 << 20), 32 << 20), hard_cap))

    cost = pl.CostEstimate(
        flops=2 * Mp * Np * Kp,
        transcendentals=0,
        bytes_accessed=int(n_blocks * Mp * Kp * itm + m_blocks * Np * Kp * itw
                           + Mp * Np * ito + (Np * 4 if has_bias else 0)),
    )

    kernel = _make_kernel(has_bias, multi_k, acc_in_out, kn_layout)
    in_specs = [x_spec, w_spec] + ([b_spec] if has_bias else [])
    args = (x2d, weight) + ((b2d,) if has_bias else ())

    out = pl.pallas_call(
        kernel,
        out_shape=jax.ShapeDtypeStruct((Mp, Np), out_dtype),
        grid_spec=pltpu.PrefetchScalarGridSpec(
            num_scalar_prefetch=0,
            grid=grid,
            in_specs=in_specs,
            out_specs=o_spec,
            scratch_shapes=scratch,
        ),
        compiler_params=pltpu.CompilerParams(
            dimension_semantics=semantics,
            vmem_limit_bytes=vmem_limit,
        ),
        cost_estimate=cost,
    )(*args)

    if (Mp, Np) != (M, N):
        out = out[:M, :N]
    return out.reshape(*orig_shape[:-1], N)


def init_linear_params(key, in_features, out_features, bias=True,
                       dtype=jnp.float32):
    """Mirror nn.Linear.reset_parameters(): kaiming-uniform(a=sqrt(5)) =>
    U(-1/sqrt(fan_in), 1/sqrt(fan_in)) for both weight and bias."""
    kw, kb = jax.random.split(key)
    bound = 1.0 / jnp.sqrt(jnp.float32(in_features))
    weight = jax.random.uniform(
        kw, (out_features, in_features), dtype=dtype, minval=-bound, maxval=bound
    )
    b = None
    if bias:
        b = jax.random.uniform(
            kb, (out_features,), dtype=dtype, minval=-bound, maxval=bound
        )
    return weight, b


# TODO(synk): quant=True paths (bnb Linear8bitLt / Linear4bit) have no clean
# Pallas equivalent without replicating bitsandbytes quantization state; only
# the standard (quant=False) nn.Linear forward is implemented here.

if __name__ == "__main__":
    key = jax.random.PRNGKey(0)
    k_x, k_p, k_x2, k_p2, k_x3, k_p3 = jax.random.split(key, 6)

    # 1) Small demo shape (single-K fast path, bias, N<128 -> lane-pad to 128).
    batch, seq, in_features, out_features = 2, 8, 32, 64
    x = jax.random.normal(k_x, (batch, seq, in_features), dtype=jnp.float32)
    weight, bias = init_linear_params(k_p, in_features, out_features, bias=True)
    y = jax.block_until_ready(linear_pallas(x, weight, bias))
    y_ref = x @ weight.T + bias
    assert y.shape == (batch, seq, out_features)
    assert jnp.allclose(y, y_ref, atol=1e-5, rtol=1e-5)

    # 2) Multi-K path (accumulates into the resident f32 output), no bias.
    x2 = jax.random.normal(k_x2, (4, 64, 256), dtype=jnp.float32)
    w2, _ = init_linear_params(k_p2, 256, 128, bias=False)
    y2 = jax.block_until_ready(linear_pallas(x2, w2, None, tk=128))
    y2_ref = x2 @ w2.T
    assert y2.shape == (4, 64, 128)
    assert jnp.allclose(y2, y2_ref, atol=1e-4, rtol=1e-4)

    # 3) Pre-transposed (K, N) weight path + bf16 compute with f32 accumulate.
    x3 = jax.random.normal(k_x3, (2, 16, 128), dtype=jnp.float32)
    w3, b3 = init_linear_params(k_p3, 128, 256, bias=True)
    y3 = jax.block_until_ready(
        linear_pallas(x3, w3.T, b3, weight_layout="kn",
                      compute_dtype=jnp.bfloat16))
    y3_ref = x3 @ w3.T + b3
    assert y3.shape == (2, 16, 256)
    assert jnp.allclose(y3, y3_ref, atol=3e-2, rtol=3e-2)

    print("KERNEL_OK")
</pallas_src>

<mosaic_0001>
module attributes {stable_mosaic.version = 11 : i64} {
  func.func @kernel(%arg0: i32, %arg1: i32, %arg2: memref<8x32xf32, #tpu.memory_space<vmem>>, %arg3: memref<128x32xf32, #tpu.memory_space<vmem>>, %arg4: memref<1x128xf32, #tpu.memory_space<vmem>>, %arg5: memref<8x128xf32, #tpu.memory_space<vmem>>) attributes {dimension_semantics = [#tpu.dimension_semantics<parallel>, #tpu.dimension_semantics<parallel>], iteration_bounds = array<i64: 2, 1>, scalar_prefetch = 0 : i64, scratch_operands = 0 : i64, tpu.core_type = #tpu.core_type<tc>, window_params = [{transform_indices = @transform_0, window_bounds = array<i64: 8, 32>}, {transform_indices = @transform_1, window_bounds = array<i64: 128, 32>}, {transform_indices = @transform_2, window_bounds = array<i64: 1, 128>}, {transform_indices = @transform_3, window_bounds = array<i64: 8, 128>}]} {
    %c0 = arith.constant 0 : index
    %c0_0 = arith.constant 0 : index
    %0 = vector.load %arg2[%c0, %c0_0] : memref<8x32xf32, #tpu.memory_space<vmem>>, vector<8x32xf32>
    %c0_1 = arith.constant 0 : index
    %c0_2 = arith.constant 0 : index
    %1 = vector.load %arg3[%c0_1, %c0_2] : memref<128x32xf32, #tpu.memory_space<vmem>>, vector<128x32xf32>
    %cst = arith.constant dense<0.000000e+00> : vector<8x128xf32>
    %2 = tpu.matmul %0, %1, %cst {dimension_numbers = #tpu.dot_dimension_numbers<[1], [1], [0], [0], [0, 0, 1, 0], [], []>} : vector<8x32xf32>, vector<128x32xf32>, vector<8x128xf32> -> vector<8x128xf32>
    %c0_3 = arith.constant 0 : index
    %c0_4 = arith.constant 0 : index
    %3 = vector.load %arg4[%c0_3, %c0_4] : memref<1x128xf32, #tpu.memory_space<vmem>>, vector<1x128xf32>
    %4 = vector.broadcast %3 : vector<1x128xf32> to vector<8x128xf32>
    %5 = arith.addf %2, %4 : vector<8x128xf32>
    %c0_5 = arith.constant 0 : index
    %c0_6 = arith.constant 0 : index
    %6 = vector.load %arg5[%c0_5, %c0_6] : memref<8x128xf32, #tpu.memory_space<vmem>>, vector<8x128xf32>
    tpu.vector_store %arg5[%c0_5, %c0_6], %5 {strides = array<i32>} : memref<8x128xf32, #tpu.memory_space<vmem>>, vector<8x128xf32>,
    return
  }
  func.func @transform_0(%arg0: i32, %arg1: i32) -> (i32, i32) {
    %c0_i32 = arith.constant 0 : i32
    %c0_i32_0 = arith.constant 0 : i32
    return %arg0, %c0_i32 : i32, i32
  }
  func.func @transform_1(%arg0: i32, %arg1: i32) -> (i32, i32) {
    %c0_i32 = arith.constant 0 : i32
    %c0_i32_0 = arith.constant 0 : i32
    return %arg1, %c0_i32 : i32, i32
  }
  func.func @transform_2(%arg0: i32, %arg1: i32) -> (i32, i32) {
    %c0_i32 = arith.constant 0 : i32
    %c0_i32_0 = arith.constant 0 : i32
    return %c0_i32, %arg1 : i32, i32
  }
  func.func @transform_3(%arg0: i32, %arg1: i32) -> (i32, i32) {
    %c0_i32 = arith.constant 0 : i32
    return %arg0, %arg1 : i32, i32
  }
}

</mosaic_0001>

<bundles_post_ra>
// kernel: linear_pallas.1
= control target key start
LH: loop header
LB: loop body
LE: loop exit
PB: predicated region body
PF: predicated region fallthrough
CT: control target
= control target key end

     0   :  { %s512_s12 = smov 0   ;;  %s514_s13 = smov 0   ;;  %s617_s0 = inlined_call_operand.vmem [shape: f32[16,32], index: 0, kind: input, shape index: {}]   ;;  %s618_s1 = inlined_call_operand.vmem [shape: f32[128,32], index: 1, kind: input, shape index: {}]   ;;  %s619_s2 = inlined_call_operand.vmem [shape: f32[1,128], index: 2, kind: input, shape index: {}]   ;;  %s620_s3 = inlined_call_operand.vmem [shape: f32[16,128], index: 3, kind: output, shape index: {}]  }
   0x1   :  { %s516_s14 = smov 0  }
   0x2 LB: > { %s25_s15 = sadd.s32 1, %s486_s13  ;;  %p421_p0 = scmp.ge.s32.totalorder %s490_s14, 1  ;;  %s490_s14 = sphi %s516_s14, %s13_s14   ;;  %s486_s13 = sphi %s514_s13, %s622_s13   ;;  %s482_s12 = sphi %s512_s12, %s621_s12  }
   0x3   : > { %p27_p1 = scmp.ge.s32.totalorder %s25_s15, 2  ;;  %p169_p2 = scmp.lt.s32.totalorder %s490_s14, 3 }
   0x5   : > { %s624_s15 = smov (%p27_p1, %s25_s15), 0  ;;  %p170_p3 = pnand %p421_p0, %p169_p2 }
   0x6   : > { %p202_p4 = scmp.lt.s32.totalorder (!%p170_p3), %s482_s12, 1 }
   0x7   : > { %173 = sbr.rel (%p170_p3) target bundleno = 205 (0xcd), region = 32 }
   0xc   : > { %v238_v0 = vld [vmem:[%s618_s1 + $0x78] sm:$0xff]  ;;  %vm243_vm0 = vcmask 261120   ;;  %v237_v1 = vld [vmem:[%s618_s1 + $0x70] sm:$0xff]  ;;  %v236_v2 = vld [vmem:[%s618_s1 + $0x68] sm:$0xff]  ;;  %s626_s12 = smov (!%p202_p4, %s482_s12), 1 }
   0xd   : > { %424 = vmatpush.xpose.msk.msra.mxu0 %vm243_vm0, %v238_v0  ;;  %v235_v3 = vld [vmem:[%s618_s1 + $0x60] sm:$0xff]  ;;  %v234_v4 = vld [vmem:[%s618_s1 + $0x58] sm:$0xff]  ;;  %v233_v5 = vld [vmem:[%s618_s1 + $0x50] sm:$0xff]  ;;  %s422_s23 = sshll.u32 %s626_s12, 3 }
   0xe   : > { %v232_v6 = vld [vmem:[%s618_s1 + $0x48] sm:$0xff]  ;;  %v231_v7 = vld [vmem:[%s618_s1 + $0x40] sm:$0xff]  ;;  %v230_v8 = vld [vmem:[%s618_s1 + $0x38] sm:$0xff]  ;;  %s205_s28 = scalar_lea.vmem %s617_s0, %s422_s23  ;;  %s221_s5 = scalar_lea.vmem %s620_s3, %s422_s23 }
   0xf   : > { %v229_v9 = vld [vmem:[%s618_s1 + $0x30] sm:$0xff]  ;;  %v228_v10 = vld [vmem:[%s618_s1 + $0x28] sm:$0xff]  ;;  %v227_v11 = vld [vmem:[%s618_s1 + $0x20] sm:$0xff] }
  0x10   : > { %v226_v12 = vld [vmem:[%s618_s1 + $0x18] sm:$0xff]  ;;  %v225_v13 = vld [vmem:[%s618_s1 + $0x10] sm:$0xff]  ;;  %v224_v14 = vld [vmem:[%s618_s1 + $0x8] sm:$0xff] }
  0x11   : > { %425 = vmatpush.xpose.msk.msra.mxu0 %vm243_vm0, %v237_v1  ;;  %v223_v15 = vld [vmem:[%s618_s1] sm:$0xff] }
  0x12   : > { %v222_v16 = vld [vmem:[%s205_s28] sm:$0xff] }
  0x13   : > { %v467_v17 = vld [vmem:[%s619_s2] ss:$0 sm:$0xff] }
  0x15   : > { %426 = vmatpush.xpose.msk.msra.mxu0 %vm243_vm0, %v236_v2 }
  0x19   : > { %427 = vmatpush.xpose.msk.msra.mxu0 %vm243_vm0, %v235_v3 }
  0x1d   : > { %428 = vmatpush.xpose.msk.msra.mxu0 %vm243_vm0, %v234_v4 }
  0x21   : > { %429 = vmatpush.xpose.msk.msra.mxu0 %vm243_vm0, %v233_v5 }
  0x25   : > { %430 = vmatpush.xpose.msk.msra.mxu0 %vm243_vm0, %v232_v6 }
  0x29   : > { %431 = vmatpush.xpose.msk.msra.mxu0 %vm243_vm0, %v231_v7 }
  0x2d   : > { %432 = vmatpush.xpose.msk.msra.mxu0 %vm243_vm0, %v230_v8 }
  0x31   : > { %433 = vmatpush.xpose.msk.msra.mxu0 %vm243_vm0, %v229_v9 }
  0x35   : > { %434 = vmatpush.xpose.msk.msra.mxu0 %vm243_vm0, %v228_v10 }
  0x39   : > { %435 = vmatpush.xpose.msk.msra.mxu0 %vm243_vm0, %v227_v11 }
  0x3d   : > { %436 = vmatpush.xpose.msk.msra.mxu0 %vm243_vm0, %v226_v12 }
  0x41   : > { %437 = vmatpush.xpose.msk.msra.mxu0 %vm243_vm0, %v225_v13 }
  0x45   : > { %438 = vmatpush.xpose.msk.msra.mxu0 %vm243_vm0, %v224_v14 }
  0x49   : > { %439 = vmatpush.xpose.msk.msra.mxu0 %vm243_vm0, %v223_v15 }
  0x4c   : > { %440 = vmatmul.msk.f32.vlgmr.msra.gmra.mxu0 %vm243_vm0, %v222_v16 }
  0xc9   : > { %v312_v18 = vpop.f32.mrf.mxu0 }
  0xca   : > { %v313_v19 = vadd.f32 %v467_v17, %v312_v18 }
  0xcc   : > { %315 = vst [vmem:[%s221_s5] sm:$0xff] %v313_v19 }
  0xcd PF: > { %s13_s14 = sadd.s32 1, %s490_s14   ;;  %s621_s12 = smov %s486_s13 }
  0xce   : > { %p10_p5 = scmp.ge.s32.totalorder %s13_s14, 4   ;;  %s622_s13 = smov %s624_s15 }
  0xd0   :  { %12 = sbr.rel (!%p10_p5) target bundleno = 2 (0x2), region = 68 }

</bundles_post_ra>
